<compile_context>
chip_gen: v5e
topology: v5e:2x2
jax: 0.10.0
libtpu: 0.0.40
codegen_flags: <defaults>
</compile_context>

<pallas_src>
import functools

import jax
import jax.numpy as jnp
import numpy as np
from jax.experimental import pallas as pl
from jax.experimental.pallas import tpu as pltpu


def _round_up(x, m):
    return (x + m - 1) // m * m


def _cdiv(a, b):
    return -(-a // b)


# ----------------------------------------------------------------------------
# Pallas kernels
# ----------------------------------------------------------------------------
def _focal_loss_kernel(logits_ref, tgt_ref, acc_ref, *,
                       alpha, gamma, label_smoothing):
    """'new_focal_loss' + one_hot + (-2 ignore) masking, per-core accumulation.

    logits_ref: (C, TN) block — classes on sublanes, flattened anchors on lanes.
    tgt_ref:    (1, TN) int32 class ids (-2 = ignore, -1 = background).
    acc_ref:    (1, 8, 128) per-core VMEM accumulator (resident across axis 1).
    """
    @pl.when(pl.program_id(1) == 0)
    def _():
        acc_ref[...] = jnp.zeros_like(acc_ref)

    x = logits_ref[...].astype(jnp.float32)                 # (C, TN)
    tgt = tgt_ref[...]                                      # (1, TN) i32

    cls_ids = jax.lax.broadcasted_iota(jnp.int32, x.shape, 0)   # sublane iota
    match = (cls_ids == tgt) & (tgt >= 0)                   # boolean one-hot
    valid = tgt != -2                                       # (1, TN) ignore mask

    # Shared transcendental: e = exp(-|x|) feeds both sigmoid and log1p term.
    e = jnp.exp(-jnp.abs(x))
    r = pl.reciprocal(1.0 + e, approx=True)                 # sigmoid(|x|)
    pred_prob = jnp.where(x >= 0.0, r, 1.0 - r)             # sigmoid(x)
    log1pe = jnp.log1p(e)

    # selects instead of float one-hot blends (saves ~2 VALU ops per blend)
    one_minus_pt = jnp.where(match, 1.0 - pred_prob, pred_prob)   # 1 - p_t
    alpha_factor = jnp.where(match, alpha, 1.0 - alpha)
    if gamma == 1.5:
        modulating = one_minus_pt * jnp.sqrt(one_minus_pt)  # x**1.5 exact
    elif gamma == 2.0:
        modulating = one_minus_pt * one_minus_pt
    else:
        modulating = one_minus_pt ** gamma

    if label_smoothing > 0.0:
        # tgt_s = onehot*(1-ls) + 0.5*ls  ->  select between two constants
        x_tgt = x * jnp.where(match, 1.0 - 0.5 * label_smoothing,
                              0.5 * label_smoothing)
    else:
        x_tgt = jnp.where(match, x, 0.0)

    # binary_cross_entropy_with_logits (stable form), reusing e via log1pe.
    ce = jnp.maximum(x, 0.0) - x_tgt + log1pe
    weighted = jnp.where(valid, alpha_factor * modulating * ce, 0.0)

    # broadcast add of the tile sum into the resident per-core block;
    # 1/normalizer is applied to the final scalar in the wrapper.
    acc_ref[...] += jnp.sum(weighted)


def _box_loss_kernel(bo_ref, bt_ref, anc_ref, sum_ref, cnt_ref, *, loss_type):
    """decode_box_outputs + IoU + (g/d/e)IoU penalty, masked sum & count.

    bo_ref / bt_ref: (1, 4, TS, 128) blocks — component-major dense planes.
    anc_ref:         (4, TS, 128) block = [ycenter_a, xcenter_a, ha, wa] planes
                     (precomputed in the wrapper, shared across the batch axis).
    sum_ref/cnt_ref: (1, 8, 128) per-core VMEM accumulators.
    """
    @pl.when((pl.program_id(1) == 0) & (pl.program_id(2) == 0))
    def _():
        sum_ref[...] = jnp.zeros_like(sum_ref)
        cnt_ref[...] = jnp.zeros_like(cnt_ref)

    eps = 1e-07

    to_y, to_x, to_h, to_w = (bo_ref[0, k].astype(jnp.float32) for k in range(4))
    tt_y, tt_x, tt_h, tt_w = (bt_ref[0, k].astype(jnp.float32) for k in range(4))
    ycenter_a = anc_ref[0]
    xcenter_a = anc_ref[1]
    ha = anc_ref[2]
    wa = anc_ref[3]

    # mask = torch.all(target != 0.0, dim=1); zero-padded tail -> mask == False.
    mask = ((tt_y != 0.0) & (tt_x != 0.0) & (tt_h != 0.0) & (tt_w != 0.0))

    def decode(ty, tx, th, tw):
        w = jnp.exp(tw) * wa
        h = jnp.exp(th) * ha
        yc = ty * ha + ycenter_a
        xc = tx * wa + xcenter_a
        return yc - h * 0.5, xc - w * 0.5, yc + h * 0.5, xc + w * 0.5

    gy1, gx1, gy2, gx2 = decode(tt_y, tt_x, tt_h, tt_w)   # decoded target
    py1, px1, py2, px2 = decode(to_y, to_x, to_h, to_w)   # decoded output

    Ag = (gx2 - gx1) * (gy2 - gy1)
    Ap = (px2 - px1) * (py2 - py1)
    yI1 = jnp.maximum(gy1, py1)
    xI1 = jnp.maximum(gx1, px1)
    yI2 = jnp.minimum(gy2, py2)
    xI2 = jnp.minimum(gx2, px2)
    inter = jnp.where((xI2 > xI1) & (yI2 > yI1), (xI2 - xI1) * (yI2 - yI1), 0.0)
    union = Ap + Ag - inter
    iou = inter / (union + eps)

    yc1 = jnp.minimum(gy1, py1)
    xc1 = jnp.minimum(gx1, px1)
    yc2 = jnp.maximum(gy2, py2)
    xc2 = jnp.maximum(gx2, px2)

    if loss_type == 'giou':
        Ac = (xc2 - xc1) * (yc2 - yc1)
        penalty = (Ac - union) / (Ac + eps)
    elif loss_type == 'diou':
        xct = (gx2 + gx1) * 0.5
        yct = (gy2 + gy1) * 0.5
        xco = (px2 + px1) * 0.5
        yco = (py2 + py1) * 0.5
        p2 = (yct - yco) ** 2 + (xct - xco) ** 2
        c2 = (xc2 - xc1) ** 2 + (yc2 - yc1) ** 2
        penalty = p2 / (c2 + eps)
    elif loss_type == 'eiou':
        xct = (gx2 + gx1) * 0.5
        yct = (gy2 + gy1) * 0.5
        xco = (px2 + px1) * 0.5
        yco = (py2 + py1) * 0.5
        p2 = (yct - yco) ** 2 + (xct - xco) ** 2
        wc = xc2 - xc1
        hc = yc2 - yc1
        w_gt = gx2 - gx1
        h_gt = gy2 - gy1
        w_pr = px2 - px1
        h_pr = py2 - py1
        penalty = (p2 / (wc ** 2 + hc ** 2 + eps)
                   + (w_gt - w_pr) ** 2 / (wc ** 2 + eps)
                   + (h_gt - h_pr) ** 2 / (hc ** 2 + eps))
    else:
        # TODO(synk): 'iou' branch is degenerate in the reference (empty loss list)
        raise AssertionError('no valid iou loss')

    loss = 1.0 - iou + penalty
    sum_ref[...] += jnp.sum(jnp.where(mask, loss, 0.0))
    cnt_ref[...] += jnp.sum(jnp.where(mask, 1.0, 0.0))


# ----------------------------------------------------------------------------
# Pallas wrappers
# ----------------------------------------------------------------------------
def _focal_loss_sum(logits_cn, tgt_1n, tile_n, tiles_per_par, n_par, *,
                    alpha, gamma, label_smoothing):
    C, _ = logits_cn.shape
    kern = functools.partial(_focal_loss_kernel, alpha=alpha, gamma=gamma,
                             label_smoothing=label_smoothing)
    # 2 buffers per input + resident accumulator, with margin; clamp so it is
    # legal on v5e/v6e (128 MiB) and v7x (64 MiB physical per TC).
    need = 2 * C * tile_n * 4 + 2 * tile_n * 4 + 8 * 128 * 4
    vmem_limit = int(min(max(need * 3 // 2 + (1 << 20), 16 << 20), 60 << 20))
    out = pl.pallas_call(
        kern,
        out_shape=jax.ShapeDtypeStruct((n_par, 8, 128), jnp.float32),
        grid=(n_par, tiles_per_par),
        in_specs=[pl.BlockSpec((C, tile_n),
                               lambda p, i: (0, p * tiles_per_par + i)),
                  pl.BlockSpec((1, tile_n),
                               lambda p, i: (0, p * tiles_per_par + i))],
        out_specs=pl.BlockSpec((1, 8, 128), lambda p, i: (p, 0, 0)),
        compiler_params=pltpu.CompilerParams(
            dimension_semantics=("parallel", "arbitrary"),
            vmem_limit_bytes=vmem_limit),
    )(logits_cn, tgt_1n)
    return jnp.sum(out[:, 0, 0])          # per-core partials -> scalar


def _box_loss_sums(bo_p, bt_p, anc_p, tile_s, chunks_per_par, n_par, *,
                   loss_type):
    B = bo_p.shape[0]
    kern = functools.partial(_box_loss_kernel, loss_type=loss_type)
    s, c = pl.pallas_call(
        kern,
        out_shape=(jax.ShapeDtypeStruct((n_par, 8, 128), jnp.float32),
                   jax.ShapeDtypeStruct((n_par, 8, 128), jnp.float32)),
        grid=(n_par, chunks_per_par, B),   # batch innermost -> anchor block reuse
        in_specs=[pl.BlockSpec((1, 4, tile_s, 128),
                               lambda p, j, b: (b, 0, p * chunks_per_par + j, 0)),
                  pl.BlockSpec((1, 4, tile_s, 128),
                               lambda p, j, b: (b, 0, p * chunks_per_par + j, 0)),
                  pl.BlockSpec((4, tile_s, 128),
                               lambda p, j, b: (0, p * chunks_per_par + j, 0))],
        out_specs=(pl.BlockSpec((1, 8, 128), lambda p, j, b: (p, 0, 0)),
                   pl.BlockSpec((1, 8, 128), lambda p, j, b: (p, 0, 0))),
        compiler_params=pltpu.CompilerParams(
            dimension_semantics=("parallel", "arbitrary", "arbitrary")),
    )(bo_p, bt_p, anc_p)
    return jnp.sum(s[:, 0, 0]), jnp.sum(c[:, 0, 0])


def detection_loss(cls_outputs, box_outputs, cls_targets, box_targets,
                   num_positives, anchors, *, num_classes, alpha, gamma,
                   box_loss_weight, label_smoothing, box_loss_type,
                   legacy_focal=False, cls_tile_n=32768, box_tile_s=512):
    assert not legacy_focal  # TODO(synk): legacy focal variant not wired up
    num_positives_sum = (jnp.sum(num_positives) + 1.0).astype(jnp.float32)

    # ---- classification focal loss: fused across levels, [C, N] layout ----
    logit_cols, tgt_cols = [], []
    for l in range(len(cls_outputs)):
        co = cls_outputs[l]                               # (B, A*C, H, W)
        B, AC, H, W = co.shape
        assert AC % num_classes == 0, "expect anchor-major/class-minor head"
        A = AC // num_classes
        lc = co.reshape(B, A, num_classes, H, W)
        lc = jnp.transpose(lc, (2, 0, 3, 4, 1)).reshape(num_classes,
                                                        B * H * W * A)
        logit_cols.append(lc)
        tgt_cols.append(cls_targets[l].reshape(-1).astype(jnp.int32))

    N = sum(c.shape[1] for c in logit_cols)
    tn = min(cls_tile_n, _round_up(N, 128))
    num_tiles = _cdiv(N, tn)
    n_par_c = 2 if num_tiles >= 2 else 1
    tiles_per_par = _cdiv(num_tiles, n_par_c)
    Np = n_par_c * tiles_per_par * tn
    pad_n = Np - N
    if pad_n:   # pad folded into the concat (one fewer HBM materialization)
        logit_cols.append(jnp.zeros((num_classes, pad_n), logit_cols[0].dtype))
        tgt_cols.append(jnp.full((pad_n,), -2, jnp.int32))
    logits_cn = jnp.concatenate(logit_cols, axis=1)       # (C, Np) lane-dense
    tgt_1n = jnp.concatenate(tgt_cols, axis=0)[None, :]   # (1, Np)

    cls_sum = _focal_loss_sum(logits_cn, tgt_1n, tn, tiles_per_par, n_par_c,
                              alpha=alpha, gamma=gamma,
                              label_smoothing=label_smoothing)
    cls_loss = cls_sum / num_positives_sum

    # ---- box loss: dense component planes, anchors shared across batch ----
    batch_size = box_outputs[0].shape[0]
    bo = jnp.concatenate(
        [jnp.transpose(z, (0, 2, 3, 1)).reshape(batch_size, -1, 4)
         for z in box_outputs], axis=1)
    bt = jnp.concatenate(
        [z.reshape(batch_size, -1, 4) for z in box_targets], axis=1)
    T = bo.shape[1]
    S = _cdiv(T, 128)
    ts = min(box_tile_s, S)
    chunks = _cdiv(S, ts)
    n_par_b = 2 if chunks >= 2 else 1
    chunks_per_par = _cdiv(chunks, n_par_b)
    Sp = n_par_b * chunks_per_par * ts
    Tp = Sp * 128

    def to_planes(x):   # (B, T, 4) -> (B, 4, Sp, 128), zero-padded tail
        x = jnp.pad(x, ((0, 0), (0, Tp - T), (0, 0)))
        return jnp.transpose(x, (0, 2, 1)).reshape(batch_size, 4, Sp, 128)

    bo_p = to_planes(bo)
    bt_p = to_planes(bt)

    # precomputed anchor center/size planes (ycenter, xcenter, ha, wa)
    a = anchors.astype(jnp.float32)
    anc_planes = jnp.stack([(a[:, 0] + a[:, 2]) * 0.5,
                            (a[:, 1] + a[:, 3]) * 0.5,
                            a[:, 2] - a[:, 0],
                            a[:, 3] - a[:, 1]], axis=0)        # (4, T)
    anc_p = jnp.pad(anc_planes, ((0, 0), (0, Tp - T))).reshape(4, Sp, 128)

    loss_sum, loss_cnt = _box_loss_sums(bo_p, bt_p, anc_p, ts,
                                        chunks_per_par, n_par_b,
                                        loss_type=box_loss_type)
    box_loss = loss_sum / jnp.maximum(loss_cnt, 1.0)       # guarded divide

    total_loss = cls_loss + box_loss_weight * box_loss
    return total_loss, cls_loss, box_loss


# ----------------------------------------------------------------------------
# Pure-JAX reference (mirrors the PyTorch loss_fn) for correctness checking
# ----------------------------------------------------------------------------
def reference_loss(cls_outputs, box_outputs, cls_targets, box_targets,
                   num_positives, anchors, *, num_classes, alpha, gamma,
                   box_loss_weight, label_smoothing, box_loss_type):
    eps = 1e-07
    nps = jnp.sum(num_positives) + 1.0
    cls_losses = []
    for l in range(len(cls_outputs)):
        tgt = cls_targets[l]
        oh = ((tgt[..., None] == jnp.arange(num_classes)) &
              (tgt[..., None] >= 0)).astype(jnp.float32)
        B, H, W, A, C = oh.shape
        oh2 = oh.reshape(B, H, W, A * C)
        logits = jnp.transpose(cls_outputs[l], (0, 2, 3, 1)).astype(jnp.float32)
        p = jax.nn.sigmoid(logits)
        p_t = oh2 * p + (1 - oh2) * (1 - p)
        af = oh2 * alpha + (1 - oh2) * (1 - alpha)
        mod = (1 - p_t) ** gamma
        tgt_s = oh2 * (1 - label_smoothing) + 0.5 * label_smoothing \
            if label_smoothing > 0 else oh2
        ce = jnp.maximum(logits, 0) - logits * tgt_s + jnp.log1p(
            jnp.exp(-jnp.abs(logits)))
        cl = (1.0 / nps) * af * mod * ce
        cl = cl.reshape(B, H, W, A, C) * (tgt != -2)[..., None]
        cls_losses.append(jnp.sum(cl))
    cls_loss = jnp.sum(jnp.stack(cls_losses))

    bs = box_outputs[0].shape[0]
    bo = jnp.concatenate([jnp.transpose(z, (0, 2, 3, 1)).reshape(bs, -1, 4)
                          for z in box_outputs], axis=1)
    bt = jnp.concatenate([z.reshape(bs, -1, 4) for z in box_targets], axis=1)
    anc = jnp.broadcast_to(anchors[None], bo.shape)

    def decode(codes, a):
        yca = (a[..., 0] + a[..., 2]) / 2
        xca = (a[..., 1] + a[..., 3]) / 2
        ha = a[..., 2] - a[..., 0]
        wa = a[..., 3] - a[..., 1]
        ty, tx, th, tw = [codes[..., i] for i in range(4)]
        w = jnp.exp(tw) * wa
        h = jnp.exp(th) * ha
        yc = ty * ha + yca
        xc = tx * wa + xca
        return jnp.stack([yc - h / 2, xc - w / 2, yc + h / 2, xc + w / 2], -1)

    mask = jnp.all(bt != 0.0, axis=-1).astype(jnp.float32)
    dt = decode(bt, anc)
    do = decode(bo, anc)
    Ag = (dt[..., 3] - dt[..., 1]) * (dt[..., 2] - dt[..., 0])
    Ap = (do[..., 3] - do[..., 1]) * (do[..., 2] - do[..., 0])
    yI1 = jnp.maximum(dt[..., 0], do[..., 0])
    xI1 = jnp.maximum(dt[..., 1], do[..., 1])
    yI2 = jnp.minimum(dt[..., 2], do[..., 2])
    xI2 = jnp.minimum(dt[..., 3], do[..., 3])
    inter = jnp.where((xI2 > xI1) & (yI2 > yI1), (xI2 - xI1) * (yI2 - yI1), 0.0)
    U = Ap + Ag - inter
    iou = inter / (U + eps)
    assert box_loss_type == 'giou'
    yc1 = jnp.minimum(dt[..., 0], do[..., 0])
    xc1 = jnp.minimum(dt[..., 1], do[..., 1])
    yc2 = jnp.maximum(dt[..., 2], do[..., 2])
    xc2 = jnp.maximum(dt[..., 3], do[..., 3])
    Ac = (xc2 - xc1) * (yc2 - yc1)
    penalty = (Ac - U) / (Ac + eps)
    loss = 1.0 - iou + penalty
    box_loss = jnp.sum(loss * mask) / jnp.sum(mask)
    total = cls_loss + box_loss_weight * box_loss
    return total, cls_loss, box_loss


# ----------------------------------------------------------------------------
# Main
# ----------------------------------------------------------------------------
if __name__ == "__main__":
    key = jax.random.PRNGKey(0)

    # config (synthetic, effdet-like)
    num_classes = 8
    A = 3                      # anchors per location
    alpha, gamma = 0.25, 1.5
    box_loss_weight = 50.0
    label_smoothing = 0.0
    box_loss_type = 'giou'
    B = 2
    level_hw = [(8, 8), (4, 4)]

    keys = jax.random.split(key, 16)
    cls_outputs, box_outputs, cls_targets, box_targets = [], [], [], []
    ki = 0
    for (H, W) in level_hw:
        cls_outputs.append(
            jax.random.normal(keys[ki], (B, A * num_classes, H, W),
                              jnp.float32)); ki += 1
        box_outputs.append(
            jax.random.normal(keys[ki], (B, A * 4, H, W),
                              jnp.float32) * 0.2); ki += 1
        cls_targets.append(
            jax.random.randint(keys[ki], (B, H, W, A), -2, num_classes)); ki += 1
        bt = jax.random.normal(keys[ki], (B, H, W, A, 4),
                               jnp.float32) * 0.2 + 0.05; ki += 1
        keep = jax.random.bernoulli(keys[ki], 0.3,
                                    (B, H, W, A, 1)).astype(jnp.float32); ki += 1
        box_targets.append((bt * keep).reshape(B, H, W, A * 4))

    T = sum(h * w * A for (h, w) in level_hw)
    cy = jax.random.uniform(keys[ki], (T,)) * 10.0; ki += 1
    cx = jax.random.uniform(keys[ki], (T,)) * 10.0; ki += 1
    hh = jax.random.uniform(keys[ki], (T,)) * 4.0 + 1.0; ki += 1
    ww = jax.random.uniform(keys[ki], (T,)) * 4.0 + 1.0; ki += 1
    anchors = jnp.stack([cy - hh / 2, cx - ww / 2, cy + hh / 2, cx + ww / 2],
                        axis=-1).astype(jnp.float32)

    num_positives = jnp.array([3.0, 5.0], jnp.float32)

    total, cls_l, box_l = detection_loss(
        cls_outputs, box_outputs, cls_targets, box_targets, num_positives,
        anchors, num_classes=num_classes, alpha=alpha, gamma=gamma,
        box_loss_weight=box_loss_weight, label_smoothing=label_smoothing,
        box_loss_type=box_loss_type)
    jax.block_until_ready((total, cls_l, box_l))

    rt, rc, rb = reference_loss(
        cls_outputs, box_outputs, cls_targets, box_targets, num_positives,
        anchors, num_classes=num_classes, alpha=alpha, gamma=gamma,
        box_loss_weight=box_loss_weight, label_smoothing=label_smoothing,
        box_loss_type=box_loss_type)

    np.testing.assert_allclose(np.array(cls_l), np.array(rc), rtol=2e-3, atol=2e-3)
    np.testing.assert_allclose(np.array(box_l), np.array(rb), rtol=2e-3, atol=2e-3)
    np.testing.assert_allclose(np.array(total), np.array(rt), rtol=2e-3, atol=2e-3)

    print("KERNEL_OK")
</pallas_src>

<mosaic_0001>
module attributes {stable_mosaic.version = 11 : i64} {
  func.func @_focal_loss_kernel(%arg0: i32, %arg1: i32, %arg2: memref<8x512xf32, #tpu.memory_space<vmem>>, %arg3: memref<1x512xi32, #tpu.memory_space<vmem>>, %arg4: memref<1x8x128xf32, #tpu.memory_space<vmem>>) attributes {dimension_semantics = [#tpu.dimension_semantics<parallel>, #tpu.dimension_semantics<arbitrary>], iteration_bounds = array<i64: 1, 1>, scalar_prefetch = 0 : i64, scratch_operands = 0 : i64, tpu.core_type = #tpu.core_type<tc>, window_params = [{transform_indices = @transform_0, window_bounds = array<i64: 8, 512>}, {transform_indices = @transform_1, window_bounds = array<i64: 1, 512>}, {transform_indices = @transform_2, window_bounds = array<i64: 1, 8, 128>}]} {
    %c0_i32 = arith.constant 0 : i32
    %0 = arith.cmpi eq, %arg1, %c0_i32 : i32
    %1 = arith.extui %0 : i1 to i32
    %c0_i32_0 = arith.constant 0 : i32
    %2 = arith.cmpi ne, %1, %c0_i32_0 : i32
    scf.if %2 {
      %cst_21 = arith.constant 0.000000e+00 : f32
      %55 = vector.broadcast %cst_21 : f32 to vector<1x8x128xf32>
      %c0_22 = arith.constant 0 : index
      %c0_23 = arith.constant 0 : index
      %c0_24 = arith.constant 0 : index
      %56 = vector.load %arg4[%c0_22, %c0_23, %c0_24] : memref<1x8x128xf32, #tpu.memory_space<vmem>>, vector<1x8x128xf32>
      tpu.vector_store %arg4[%c0_22, %c0_23, %c0_24], %55 {strides = array<i32>} : memref<1x8x128xf32, #tpu.memory_space<vmem>>, vector<1x8x128xf32>,
    } else {
    }
    %c0 = arith.constant 0 : index
    %c0_1 = arith.constant 0 : index
    %3 = vector.load %arg2[%c0, %c0_1] : memref<8x512xf32, #tpu.memory_space<vmem>>, vector<8x512xf32>
    %c0_2 = arith.constant 0 : index
    %c0_3 = arith.constant 0 : index
    %4 = vector.load %arg3[%c0_2, %c0_3] : memref<1x512xi32, #tpu.memory_space<vmem>>, vector<1x512xi32>
    %5 = tpu.iota {dimensions = array<i32: 0>} : vector<8x512xi32>
    %6 = vector.broadcast %4 : vector<1x512xi32> to vector<8x512xi32>
    %7 = arith.cmpi eq, %5, %6 : vector<8x512xi32>
    %c0_i32_4 = arith.constant 0 : i32
    %8 = vector.broadcast %c0_i32_4 : i32 to vector<1x512xi32>
    %9 = arith.cmpi sge, %4, %8 : vector<1x512xi32>
    %10 = vector.broadcast %9 : vector<1x512xi1> to vector<8x512xi1>
    %11 = arith.andi %7, %10 : vector<8x512xi1>
    %c-2_i32 = arith.constant -2 : i32
    %12 = vector.broadcast %c-2_i32 : i32 to vector<1x512xi32>
    %13 = arith.cmpi ne, %4, %12 : vector<1x512xi32>
    %14 = math.absf %3 : vector<8x512xf32>
    %cst = arith.constant 0.000000e+00 : f32
    %15 = vector.broadcast %cst : f32 to vector<8x512xf32>
    %16 = arith.subf %15, %14 : vector<8x512xf32>
    %17 = math.exp %16 : vector<8x512xf32>
    %cst_5 = arith.constant 1.000000e+00 : f32
    %18 = vector.broadcast %cst_5 : f32 to vector<8x512xf32>
    %19 = arith.addf %18, %17 : vector<8x512xf32>
    %20 = tpu.reciprocal %19 {approx = true} : vector<8x512xf32> -> vector<8x512xf32>
    %cst_6 = arith.constant 0.000000e+00 : f32
    %21 = vector.broadcast %cst_6 : f32 to vector<8x512xf32>
    %22 = arith.cmpf oge, %3, %21 : vector<8x512xf32>
    %cst_7 = arith.constant 1.000000e+00 : f32
    %23 = vector.broadcast %cst_7 : f32 to vector<8x512xf32>
    %24 = arith.subf %23, %20 : vector<8x512xf32>
    %25 = arith.select %22, %20, %24 : vector<8x512xi1>, vector<8x512xf32>
    %26 = math.log1p %17 : vector<8x512xf32>
    %cst_8 = arith.constant 1.000000e+00 : f32
    %27 = vector.broadcast %cst_8 : f32 to vector<8x512xf32>
    %28 = arith.subf %27, %25 : vector<8x512xf32>
    %29 = arith.select %11, %28, %25 : vector<8x512xi1>, vector<8x512xf32>
    %cst_9 = arith.constant 2.500000e-01 : f32
    %cst_10 = arith.constant 7.500000e-01 : f32
    %30 = vector.broadcast %cst_9 : f32 to vector<8x512xf32>
    %31 = vector.broadcast %cst_10 : f32 to vector<8x512xf32>
    %32 = arith.select %11, %30, %31 : vector<8x512xi1>, vector<8x512xf32>
    %33 = math.sqrt %29 : vector<8x512xf32>
    %34 = arith.mulf %29, %33 : vector<8x512xf32>
    %cst_11 = arith.constant 0.000000e+00 : f32
    %35 = vector.broadcast %cst_11 : f32 to vector<8x512xf32>
    %36 = arith.select %11, %3, %35 : vector<8x512xi1>, vector<8x512xf32>
    %cst_12 = arith.constant 0.000000e+00 : f32
    %37 = vector.broadcast %cst_12 : f32 to vector<8x512xf32>
    %38 = arith.maximumf %3, %37 : vector<8x512xf32>
    %39 = arith.subf %38, %36 : vector<8x512xf32>
    %40 = arith.addf %39, %26 : vector<8x512xf32>
    %41 = arith.mulf %32, %34 : vector<8x512xf32>
    %42 = arith.mulf %41, %40 : vector<8x512xf32>
    %cst_13 = arith.constant 0.000000e+00 : f32
    %43 = vector.shape_cast %13 : vector<1x512xi1> to vector<1x512xi1>
    %44 = vector.broadcast %43 : vector<1x512xi1> to vector<8x512xi1>
    %45 = vector.broadcast %cst_13 : f32 to vector<8x512xf32>
    %46 = arith.select %44, %42, %45 : vector<8x512xi1>, vector<8x512xf32>
    %c0_14 = arith.constant 0 : index
    %c0_15 = arith.constant 0 : index
    %c0_16 = arith.constant 0 : index
    %47 = vector.load %arg4[%c0_14, %c0_15, %c0_16] : memref<1x8x128xf32, #tpu.memory_space<vmem>>, vector<1x8x128xf32>
    %48 = vector.shape_cast %46 : vector<8x512xf32> to vector<1x8x512xf32>
    %cst_17 = arith.constant dense<0.000000e+00> : vector<1xf32>
    %49 = vector.multi_reduction <add>, %48, %cst_17 [1, 2] : vector<1x8x512xf32> to vector<1xf32>
    %50 = vector.shape_cast %49 : vector<1xf32> to vector<1x1x1xf32>
    %51 = vector.extract %50[0, 0, 0] : f32 from vector<1x1x1xf32>
    %52 = vector.broadcast %51 : f32 to vector<1x8x128xf32>
    %53 = arith.addf %47, %52 : vector<1x8x128xf32>
    %c0_18 = arith.constant 0 : index
    %c0_19 = arith.constant 0 : index
    %c0_20 = arith.constant 0 : index
    %54 = vector.load %arg4[%c0_18, %c0_19, %c0_20] : memref<1x8x128xf32, #tpu.memory_space<vmem>>, vector<1x8x128xf32>
    tpu.vector_store %arg4[%c0_18, %c0_19, %c0_20], %53 {strides = array<i32>} : memref<1x8x128xf32, #tpu.memory_space<vmem>>, vector<1x8x128xf32>,
    return
  }
  func.func @transform_0(%arg0: i32, %arg1: i32) -> (i32, i32) {
    %c1_i32 = arith.constant 1 : i32
    %0 = arith.muli %arg0, %c1_i32 : i32
    %1 = arith.addi %0, %arg1 : i32
    %c0_i32 = arith.constant 0 : i32
    %c0_i32_0 = arith.constant 0 : i32
    return %c0_i32, %1 : i32, i32
  }
  func.func @transform_1(%arg0: i32, %arg1: i32) -> (i32, i32) {
    %c1_i32 = arith.constant 1 : i32
    %0 = arith.muli %arg0, %c1_i32 : i32
    %1 = arith.addi %0, %arg1 : i32
    %c0_i32 = arith.constant 0 : i32
    %c0_i32_0 = arith.constant 0 : i32
    return %c0_i32, %1 : i32, i32
  }
  func.func @transform_2(%arg0: i32, %arg1: i32) -> (i32, i32, i32) {
    %c0_i32 = arith.constant 0 : i32
    %c0_i32_0 = arith.constant 0 : i32
    %c0_i32_1 = arith.constant 0 : i32
    return %arg0, %c0_i32, %c0_i32_0 : i32, i32, i32
  }
}

</mosaic_0001>

<bundles_post_ra>
// kernel: tpu_custom_call.1
= control target key start
LH: loop header
LB: loop body
LE: loop exit
PB: predicated region body
PF: predicated region fallthrough
CT: control target
= control target key end

     0   :  { %7 = vsyncpa [#allocation3], 0  ;;  %s703_s0 = inlined_call_operand.hbm [shape: f32[8,512], index: 0, kind: input, shape index: {}]   ;;  %s704_s1 = inlined_call_operand.hbm [shape: s32[1,512], index: 1, kind: input, shape index: {}]   ;;  %s705_s2 = inlined_call_operand.hbm [shape: f32[1,8,128], index: 2, kind: output, shape index: {}]  }
   0x1   :  { %8 = vsyncpa [#allocation6], 0 }
   0x2   :  { %9 = vsyncpa [#allocation4], 0  ;;  %s19_s11 = sshll.u32 %s703_s0, 4  ;;  %s411_s12 = smov [#allocation2]   ;;  %s20_s11 = int_to_ptr.hbm [resolvable:$true] %s19_s11 }
   0x3   :  { %s21_s13 = sshll.u32 %s411_s12, 4  ;;  %s33_s16 = sshll.u32 %s704_s1, 4  ;;  %s22_s13 = int_to_ptr.vmem [resolvable:$true] %s21_s13  ;;  %s34_s16 = int_to_ptr.hbm [resolvable:$true] %s33_s16 }
   0x4   :  { %24 = dma.hbm_to_vmem [thread:$0]  %s20_s11, 512, %s22_s13, [#allocation3]  }
   0x5   :  { %s412_s17 = smov [#allocation5]  }
   0x6   :  { %s35_s18 = sshll.u32 %s412_s17, 4  ;;  %s36_s18 = int_to_ptr.vmem [resolvable:$true] %s35_s18 }
   0x7   :  { %38 = dma.hbm_to_vmem [thread:$0]  %s34_s16, 64, %s36_s18, [#allocation6]  }
   0x8   :  { %405 = dma.done.wait [#allocation3], 512  }
   0x9   :  { %406 = vsyncadd [#allocation3], 4294966784 }
   0xa   :  { %407 = dma.done.wait [#allocation6], 64  }
   0xb   :  { %408 = vsyncadd [#allocation6], 4294967232  ;;  %v437_v0 = vld [vmem:[#allocation2] sm:$0xff]  ;;  %v439_v1 = vld [vmem:[#allocation2 + $0x8] sm:$0xff]  ;;  %v61_v17 = vlaneseq  ;;  %v413_v19 = vmov 0   ;;  %v414_v51 = vmov 0.75  }
   0xc   :  { %v441_v2 = vld [vmem:[#allocation2 + $0x10] sm:$0xff]  ;;  %v86_v3 = vand.u32 2147483647, %v437_v0  ;;  %v444_v4 = vld [vmem:[#allocation2 + $0x18] sm:$0xff]  ;;  %v87_v5 = vand.u32 2147483647, %v439_v1 }
   0xd   :  { %v88_v6 = vand.u32 2147483647, %v441_v2  ;;  %v89_v7 = vand.u32 2147483647, %v444_v4  ;;  %v449_v14 = vld [vmem:[#allocation5] sm:$0xf] }
   0xe   :  { %v90_v8 = vsub.f32 0.0, %v86_v3  ;;  %v91_v9 = vsub.f32 0.0, %v87_v5  ;;  %vm71_vm0 = vcmp.ge.s32.totalorder %v449_v14, 0  ;;  %v62_v24 = vshrl.u32 %v61_v17, 7  ;;  %s415_s0 = smov [#allocation7]   ;;  %s282_s21 = sshll.u32 %s705_s2, 4  ;;  %s283_s21 = int_to_ptr.hbm [resolvable:$true] %s282_s21 }
   0xf   :  { %v92_v10 = vsub.f32 0.0, %v88_v6  ;;  %v93_v11 = vsub.f32 0.0, %v89_v7  ;;  %v72_v20 = vsel %vm71_vm0, 1, %v413_v19  ;;  %v63_v25 = vperm.slane %v449_v14, 0  ;;  %s280_s1 = sshll.u32 %s415_s0, 4  ;;  %s281_s1 = int_to_ptr.vmem [resolvable:$true] %s280_s1 }
  0x10   :  { %v94_v12 = vmul.f32 1.442695, %v90_v8  ;;  %v96_v13 = vmul.f32 1.442695, %v91_v9  ;;  %v64_v28 = vperm.slane %v449_v14, 1  ;;  %v73_v29 = vperm.slane %v72_v20, 0 }
  0x11   :  { %v98_v15 = vmul.f32 1.442695, %v92_v10  ;;  %v100_v16 = vmul.f32 1.442695, %v93_v11  ;;  %v65_v31 = vperm.slane %v449_v14, 2  ;;  %v66_v32 = vperm.slane %v449_v14, 3 }
  0x12   :  { %301 = vpow2.f32 %v94_v12  ;;  %v74_v34 = vperm.slane %v72_v20, 1  ;;  %v75_v35 = vperm.slane %v72_v20, 2  ;;  %v76_v36 = vperm.slane %v72_v20, 3 }
  0x13   :  { %303 = vpow2.f32 %v96_v13  ;;  %vm67_vm1 = vcmp.eq.s32.totalorder %v62_v24, %v63_v25  ;;  %vm77_vm2 = vcmp.eq.s32.totalorder %v73_v29, 1  ;;  %vm469_vm3 = vcmp.eq.s32.totalorder %v62_v24, %v64_v28 }
  0x14   :  { %305 = vpow2.f32 %v98_v15  ;;  %vm473_vm4 = vcmp.eq.s32.totalorder %v62_v24, %v65_v31  ;;  %vm110_vm5 = vcmp.ge.f32.partialorder %v437_v0, 0.0  ;;  %vm478_vm6 = vcmp.eq.s32.totalorder %v62_v24, %v66_v32  ;;  %vm494_vm10 = vmand %vm67_vm1, %vm77_vm2 }
  0x15   :  { %307 = vpow2.f32 %v100_v16  ;;  %vm482_vm7 = vcmp.eq.s32.totalorder %v74_v34, 1  ;;  %vm486_vm8 = vcmp.eq.s32.totalorder %v75_v35, 1  ;;  %vm490_vm9 = vcmp.eq.s32.totalorder %v76_v36, 1 }
  0x16   :  { %vm111_vm11 = vcmp.ge.f32.partialorder %v439_v1, 0.0  ;;  %vm112_vm12 = vcmp.ge.f32.partialorder %v441_v2, 0.0  ;;  %vm113_vm13 = vcmp.ge.f32.partialorder %v444_v4, 0.0  ;;  %v505_v52 = vsel %vm494_vm10, 0.25, %v414_v51  ;;  %vm515_vm14 = vmand %vm469_vm3, %vm482_vm7 }
  0x17   :  { %vm525_vm15 = vmand %vm473_vm4, %vm486_vm8  ;;  %vm85_vm1 = vcmp.ne.s32.totalorder %v449_v14, 4294967294  ;;  %v565_v24 = vsel %vm515_vm14, 0.25, %v414_v51  ;;  %v226_v37 = vmax.f32 %v437_v0, 0.0 }
  0x18   :  { %v452_v18 = vpop.eup %301  ;;  %vm536_vm0 = vmand %vm478_vm6, %vm490_vm9  ;;  %v569_v28 = vsel %vm525_vm15, 0.25, %v414_v51 }
  0x19   :  { %v455_v21 = vpop.eup %303  ;;  %v102_v22 = vadd.f32 1.0, %v452_v18  ;;  %v125_v49 = vmul.f32 -0.5, %v452_v18  ;;  %v128_v50 = vand.u32 2147483647, %v452_v18  ;;  %v573_v29 = vsel %vm536_vm0, 0.25, %v414_v51 }
  0x1a   :  { %v458_v23 = vpop.eup %305  ;;  %v103_v26 = vadd.f32 1.0, %v455_v21  ;;  %v134_v56 = vmul.f32 -0.5, %v455_v21  ;;  %v137_v57 = vand.u32 2147483647, %v455_v21 }
  0x1b   :  { %v462_v27 = vpop.eup %307  ;;  %v104_v30 = vadd.f32 1.0, %v458_v23  ;;  %309 = vrcp.f32 %v102_v22  ;;  %v143_v3 = vmul.f32 -0.5, %v458_v23  ;;  %v126_v13 = vadd.f32 1.0, %v125_v49 }
  0x1c   :  { %v105_v33 = vadd.f32 1.0, %v462_v27  ;;  %311 = vrcp.f32 %v103_v26  ;;  %v152_v10 = vmul.f32 -0.5, %v462_v27  ;;  %v135_v15 = vadd.f32 1.0, %v134_v56 }
  0x1d   :  { %313 = vrcp.f32 %v104_v30  ;;  %v146_v17 = vand.u32 2147483647, %v458_v23  ;;  %v155_v20 = vand.u32 2147483647, %v462_v27  ;;  %vm576_vm2 = vcmp.lt.f32.partialorder %v128_v50, 0.0004427343 }
  0x1e   :  { %315 = vrcp.f32 %v105_v33  ;;  %vm580_vm3 = vcmp.lt.f32.partialorder %v137_v57, 0.0004427343  ;;  %v586_v35 = vmul.f32 %v452_v18, %v126_v13  ;;  %v589_v36 = vmul.f32 %v455_v21, %v135_v15 }
  0x1f   :  { %317 = vlog2.f32 %v102_v22  ;;  %vm593_vm4 = vcmp.lt.f32.partialorder %v146_v17, 0.0004427343  ;;  %v222_v18 = vsel %vm494_vm10, %v437_v0, 0.0  ;;  %v223_v21 = vsel %vm515_vm14, %v439_v1, 0.0 }
  0x20   :  { %319 = vlog2.f32 %v103_v26  ;;  %v144_v26 = vadd.f32 1.0, %v143_v3  ;;  %v224_v0 = vsel %vm525_vm15, %v441_v2, 0.0  ;;  %v230_v51 = vsub.f32 %v226_v37, %v222_v18 }
  0x21   :  { %v310_v39 = vpop.eup %309  ;;  %321 = vlog2.f32 %v104_v30  ;;  %v629_v56 = vsel %vm85_vm1, 1, %v413_v19 }
  0x22   :  { %v312_v44 = vpop.eup %311  ;;  %v114_v46 = vsub.f32 1.0, %v310_v39  ;;  %323 = vlog2.f32 %v105_v33  ;;  %v153_v33 = vadd.f32 1.0, %v152_v10  ;;  %v608_v43 = vmul.f32 %v458_v23, %v144_v26 }
  0x23   :  { %v314_v47 = vpop.eup %313  ;;  %v115_v48 = vsub.f32 1.0, %v312_v44  ;;  %v225_v23 = vsel %vm536_vm0, %v444_v4, 0.0 }
  0x24   :  { %v316_v53 = vpop.eup %315  ;;  %v116_v54 = vsub.f32 1.0, %v314_v47  ;;  %v118_v55 = vsel %vm110_vm5, %v310_v39, %v114_v46  ;;  %vm597_vm5 = vcmp.lt.f32.partialorder %v155_v20, 0.0004427343  ;;  %v228_v46 = vmax.f32 %v441_v2, 0.0 }
  0x25   :  { %v117_v59 = vsub.f32 1.0, %v316_v53  ;;  %v119_v60 = vsel %vm111_vm11, %v312_v44, %v115_v48  ;;  %v158_v61 = vsub.f32 1.0, %v118_v55  ;;  %v318_v25 = vpop.eup %317  ;;  %v227_v44 = vmax.f32 %v439_v1, 0.0 }
  0x26   :  { %v120_v63 = vsel %vm112_vm12, %v314_v47, %v116_v54  ;;  %v159_v5 = vsub.f32 1.0, %v119_v60  ;;  %v320_v30 = vpop.eup %319  ;;  %v124_v42 = vmul.f32 0.6931472, %v318_v25  ;;  %v613_v48 = vmul.f32 %v462_v27, %v153_v33 }
  0x27   :  { %v121_v7 = vsel %vm113_vm13, %v316_v53, %v117_v59  ;;  %v160_v8 = vsub.f32 1.0, %v120_v63  ;;  %v545_v9 = vsel %vm494_vm10, %v158_v61, %v118_v55  ;;  %v322_v34 = vpop.eup %321  ;;  %v133_v47 = vmul.f32 0.6931472, %v320_v30 }
  0x28   :  { %v161_v11 = vsub.f32 1.0, %v121_v7  ;;  %v550_v12 = vsel %vm515_vm14, %v159_v5, %v119_v60  ;;  %325 = vrsqrt.f32 %v545_v9  ;;  %v324_v38 = vpop.eup %323  ;;  %v142_v50 = vmul.f32 0.6931472, %v322_v34 }
  0x29   :  { %v554_v16 = vsel %vm525_vm15, %v160_v8, %v120_v63  ;;  %327 = vrsqrt.f32 %v550_v12  ;;  %v229_v1 = vmax.f32 %v444_v4, 0.0  ;;  %v623_v54 = vmul.f32 0.6931472, %v324_v38 }
  0x2a   :  { %v561_v22 = vsel %vm536_vm0, %v161_v11, %v121_v7  ;;  %329 = vrsqrt.f32 %v554_v16  ;;  %v130_v57 = vsel %vm576_vm2, %v586_v35, %v124_v42  ;;  %v231_v4 = vsub.f32 %v227_v44, %v223_v21 }
  0x2b   :  { %331 = vrsqrt.f32 %v561_v22  ;;  %v232_v59 = vsub.f32 %v228_v46, %v224_v0  ;;  %v139_v60 = vsel %vm580_vm3, %v589_v36, %v133_v47  ;;  %v148_v14 = vsel %vm593_vm4, %v608_v43, %v142_v50 }
  0x2c   :  { %vm177_vm6 = vcmp.eq.f32.partialorder %v545_v9, inf  ;;  %vm179_vm7 = vcmp.eq.f32.partialorder %v545_v9, 0.0  ;;  %v157_v3 = vsel %vm597_vm5, %v613_v48, %v623_v54  ;;  %v180_v8 = vand.u32 2147483648, %v545_v9 }
  0x2d   :  { %vm189_vm8 = vcmp.eq.f32.partialorder %v550_v12, inf  ;;  %vm191_vm9 = vcmp.eq.f32.partialorder %v550_v12, 0.0  ;;  %v192_v15 = vand.u32 2147483648, %v550_v12  ;;  %vm201_vm10 = vcmp.eq.f32.partialorder %v554_v16, inf }
  0x2e   :  { %v326_v41 = vpop.eup %325  ;;  %vm203_vm11 = vcmp.eq.f32.partialorder %v554_v16, 0.0  ;;  %v204_v25 = vand.u32 2147483648, %v554_v16  ;;  %vm213_vm12 = vcmp.eq.f32.partialorder %v561_v22, inf  ;;  %vm215_vm13 = vcmp.eq.f32.partialorder %v561_v22, 0.0 }
  0x2f   :  { %v171_v45 = vmul.f32 %v326_v41, %v545_v9  ;;  %v328_v49 = vpop.eup %327  ;;  %v216_v33 = vand.u32 2147483648, %v561_v22  ;;  %v233_v34 = vsub.f32 %v229_v1, %v225_v23  ;;  %v234_v38 = vadd.f32 %v230_v51, %v130_v57 }
  0x30   :  { %v330_v53 = vpop.eup %329  ;;  %v183_v55 = vmul.f32 %v328_v49, %v550_v12  ;;  %v235_v18 = vadd.f32 %v231_v4, %v139_v60  ;;  %v247_v21 = vperm.slane %v629_v56, 0  ;;  %v236_v44 = vadd.f32 %v232_v59, %v148_v14 }
  0x31   :  { %v172_v27 = vmul.f32 %v326_v41, %v171_v45  ;;  %v332_v2 = vpop.eup %331  ;;  %v195_v58 = vmul.f32 %v330_v53, %v554_v16  ;;  %v248_v48 = vperm.slane %v629_v56, 1  ;;  %v249_v45 = vperm.slane %v629_v56, 2 }
  0x32   :  { %v184_v62 = vmul.f32 %v328_v49, %v183_v55  ;;  %v207_v63 = vmul.f32 %v332_v2, %v561_v22  ;;  %v250_v51 = vperm.slane %v629_v56, 3  ;;  %vm690_vm14 = vcmp.eq.s32.totalorder %v247_v21, 1 }
  0x33   :  { %v173_v61 = vmul.f32 0.5, %v172_v27  ;;  %v196_v19 = vmul.f32 %v330_v53, %v195_v58  ;;  %v237_v27 = vadd.f32 %v233_v34, %v157_v3  ;;  %vm252_vm15 = vcmp.eq.s32.totalorder %v248_v48, 1 }
  0x34   :  { %v185_v6 = vmul.f32 0.5, %v184_v62  ;;  %v208_v7 = vmul.f32 %v332_v2, %v207_v63  ;;  %vm253_vm0 = vcmp.eq.s32.totalorder %v249_v45, 1  ;;  %vm254_vm1 = vcmp.eq.s32.totalorder %v250_v51, 1 }
  0x35   :  { %v174_v5 = vsub.f32 1.5, %v173_v61  ;;  %v197_v10 = vmul.f32 0.5, %v196_v19 }
  0x36   :  { %v186_v13 = vsub.f32 1.5, %v185_v6  ;;  %v209_v17 = vmul.f32 0.5, %v208_v7 }
  0x37   :  { %v175_v11 = vmul.f32 %v326_v41, %v174_v5  ;;  %v198_v20 = vsub.f32 1.5, %v197_v10 }
  0x38   :  { %v187_v30 = vmul.f32 %v328_v49, %v186_v13  ;;  %v210_v31 = vsub.f32 1.5, %v209_v17 }
  0x39   :  { %v176_v26 = vmul.f32 %v175_v11, %v545_v9  ;;  %v199_v32 = vmul.f32 %v330_v53, %v198_v20 }
  0x3a   :  { %v188_v36 = vmul.f32 %v187_v30, %v550_v12  ;;  %v211_v37 = vmul.f32 %v332_v2, %v210_v31 }
  0x3b   :  { %v178_v35 = vsel %vm177_vm6, %v545_v9, %v176_v26  ;;  %v200_v40 = vmul.f32 %v199_v32, %v554_v16 }
  0x3c   :  { %v181_v39 = vsel %vm179_vm7, %v180_v8, %v178_v35  ;;  %v190_v41 = vsel %vm189_vm8, %v550_v12, %v188_v36  ;;  %v212_v42 = vmul.f32 %v211_v37, %v561_v22 }
  0x3d   :  { %v218_v43 = vmul.f32 %v181_v39, %v545_v9  ;;  %v193_v46 = vsel %vm191_vm9, %v192_v15, %v190_v41  ;;  %v202_v47 = vsel %vm201_vm10, %v554_v16, %v200_v40 }
  0x3e   :  { %v205_v0 = vsel %vm203_vm11, %v204_v25, %v202_v47  ;;  %v214_v49 = vsel %vm213_vm12, %v561_v22, %v212_v42  ;;  %v219_v9 = vmul.f32 %v193_v46, %v550_v12 }
  0x3f   :  { %v238_v50 = vmul.f32 %v218_v43, %v505_v52  ;;  %v217_v23 = vsel %vm215_vm13, %v216_v33, %v214_v49  ;;  %v220_v1 = vmul.f32 %v205_v0, %v554_v16 }
  0x40   :  { %v221_v54 = vmul.f32 %v217_v23, %v561_v22  ;;  %v239_v55 = vmul.f32 %v219_v9, %v565_v24 }
  0x41   :  { %v242_v2 = vmul.f32 %v238_v50, %v234_v38  ;;  %v240_v12 = vmul.f32 %v220_v1, %v569_v28 }
  0x42   :  { %v241_v52 = vmul.f32 %v221_v54, %v573_v29  ;;  %v243_v57 = vmul.f32 %v239_v55, %v235_v18 }
  0x43   :  { %v255_v16 = vsel %vm690_vm14, %v242_v2, 0.0  ;;  %v244_v56 = vmul.f32 %v240_v12, %v236_v44 }
  0x44   :  { %v245_v58 = vmul.f32 %v241_v52, %v237_v27  ;;  %v256_v4 = vsel %vm252_vm15, %v243_v57, 0.0 }
  0x45   :  { %v257_v59 = vsel %vm253_vm0, %v244_v56, 0.0  ;;  %v260_v22 = vadd.f32 %v256_v4, %v255_v16 }
  0x46   :  { %v258_v60 = vsel %vm254_vm1, %v245_v58, 0.0 }
  0x47   :  { %v261_v61 = vadd.f32 %v260_v22, %v257_v59 }
  0x49   :  { %v262_v24 = vadd.f32 %v261_v61, %v258_v60 }
  0x4b   :  { %263 = vadd.xlane.f32.xlu0 %v262_v24 }
  0xbe   :  { %v264_v62 = vpop.xlane.xlu0 %263 }
  0xbf   :  { %v265_v28 = vrot.slane %v264_v62, 4 }
  0xc1   :  { %v266_v63 = vadd.f32 %v265_v28, %v264_v62 }
  0xc3   :  { %v267_v14 = vrot.slane %v266_v63, 2 }
  0xc5   :  { %v268_v29 = vadd.f32 %v267_v14, %v266_v63 }
  0xc7   :  { %v269_v19 = vrot.slane %v268_v29, 1 }
  0xc9   :  { %v270_v3 = vadd.f32 %v269_v19, %v268_v29 }
  0xcb   :  { %293 = vpush %v270_v3 }
  0xfc   :  { %s294_s22 = spop %293 }
  0xfd   :  { %v272_v5 = vstv %s294_s22 }
  0xfe   :  { %274 = vst [vmem:[#allocation7] sm:$0xff] %v272_v5 }
  0xff   :  { %285 = dma.vmem_to_hbm [thread:$0]  %s281_s1, 128, %s283_s21, [#allocation4]  }
 0x100   :  { %409 = dma.done.wait [#allocation4], 128  }
 0x101   :  { %410 = vsyncadd [#allocation4], 4294967168 }
 0x102   :  { %290 = vsyncpa [#allocation3], 1 }
 0x103   :  { %291 = vsyncpa [#allocation6], 1 }
 0x104   :  { %292 = vsyncpa [#allocation4], 1 }

</bundles_post_ra>
